<compile_context>
chip_gen: v7x
topology: tpu7x:2x2x1
jax: 0.10.0
libtpu: 0.0.40
codegen_flags: <defaults>
</compile_context>

<pallas_src>
import jax
import jax.numpy as jnp
from jax.experimental import pallas as pl
from jax.experimental.pallas import tpu as pltpu

HIDDEN = 100
HIDDEN_PAD = 128  # zero-padded hidden width (multiple of 128 lanes)


def _mlp_kernel(x_ref, w1_ref, b1_ref, w2_ref, b2_ref, w3_ref, b3_ref, o_ref):
    """One (TM, 1) batch tile of the fused 3-layer MLP."""
    x = x_ref[...]                                    # (TM, 1) f32

    # fc1: Linear(1, H) is an outer product -> VPU broadcast, skip the MXU.
    h = x * w1_ref[...] + b1_ref[...]                 # (TM, H) f32
    h = jnp.maximum(h, 0.01 * h)                      # leaky_relu(0.01)
    # dropout1: identity (eval mode)

    # fc2: the only real matmul. bf16 operands, f32 accumulation on the MXU.
    h = jnp.dot(h.astype(jnp.bfloat16), w2_ref[...],
                preferred_element_type=jnp.float32) + b2_ref[...]
    h = jnp.maximum(h, 0.01 * h)                      # leaky_relu(0.01)
    # dropout2: identity (eval mode)

    # fc3: Linear(H, 1) -> VPU multiply + lane reduction (XLU), skip the MXU.
    out = jnp.sum(h * w3_ref[...], axis=-1, keepdims=True) + b3_ref[0, 0]
    o_ref[...] = out.astype(o_ref.dtype)              # (TM, 1)


def _round_up(n, m):
    return ((n + m - 1) // m) * m


def _pad_to(a, shape):
    pads = [(0, t - s) for s, t in zip(a.shape, shape)]
    return jnp.pad(a, pads)


def mlp_forward(x, params, *, tm=2048):
    """x: (B, 1) float32. params: dict of w1,b1,w2,b2,w3,b3 (fan_in x fan_out)."""
    B = x.shape[0]
    H = HIDDEN_PAD

    # Pad the hidden dimension 100 -> 128 once in the wrapper; padded lanes are
    # zero through leaky_relu (leaky_relu(0)==0) and contribute 0 to fc2/fc3.
    w1 = _pad_to(params["w1"], (1, H)).astype(jnp.float32)          # (1, 128)
    b1 = _pad_to(params["b1"], (1, H)).astype(jnp.float32)          # (1, 128)
    w2 = _pad_to(params["w2"], (H, H)).astype(jnp.bfloat16)         # (128, 128) bf16
    b2 = _pad_to(params["b2"], (1, H)).astype(jnp.float32)          # (1, 128)
    w3 = _pad_to(params["w3"].T, (1, H)).astype(jnp.float32)        # (1, 128)
    b3 = params["b3"].reshape(1, 1).astype(jnp.float32)             # (1, 1) scalar

    # Batch tiling: tile rows by tm (clamped for small batches), pad B up so the
    # grid divides evenly, slice the padding off afterwards.
    tm_eff = min(tm, _round_up(B, 8))
    b_pad = _round_up(B, tm_eff)
    if b_pad != B:
        x = jnp.pad(x, ((0, b_pad - B), (0, 0)))
    grid = (b_pad // tm_eff,)

    row_spec = pl.BlockSpec((tm_eff, 1), lambda i: (i, 0))
    resident = lambda shape: pl.BlockSpec(shape, lambda i: (0, 0))

    out = pl.pallas_call(
        _mlp_kernel,
        out_shape=jax.ShapeDtypeStruct((b_pad, 1), jnp.float32),
        grid=grid,
        in_specs=[
            row_spec,                   # x tile (pipelined over the grid)
            resident((1, H)),           # w1 (resident across grid)
            resident((1, H)),           # b1
            resident((H, H)),           # w2 (bf16)
            resident((1, H)),           # b2
            resident((1, H)),           # w3 (as a row)
            pl.BlockSpec((1, 1), lambda i: (0, 0),
                         memory_space=pltpu.MemorySpace.SMEM),  # b3 scalar
        ],
        out_specs=row_spec,
        compiler_params=pltpu.CompilerParams(
            dimension_semantics=("parallel",)),
    )(x, w1, b1, w2, b2, w3, b3)

    return out[:B] if b_pad != B else out


def init_params(key):
    """Deterministic init mimicking torch.nn.Linear default (U[-1/sqrt(fan_in), +])."""
    def linear(k, fan_in, fan_out):
        kw, kb = jax.random.split(k)
        bound = 1.0 / jnp.sqrt(jnp.float32(fan_in))
        w = jax.random.uniform(kw, (fan_in, fan_out), jnp.float32, -bound, bound)
        b = jax.random.uniform(kb, (1, fan_out), jnp.float32, -bound, bound)
        return w, b

    k1, k2, k3 = jax.random.split(key, 3)
    w1, b1 = linear(k1, 1, HIDDEN)
    w2, b2 = linear(k2, HIDDEN, HIDDEN)
    w3, b3 = linear(k3, HIDDEN, 1)
    return dict(w1=w1, b1=b1, w2=w2, b2=b2, w3=w3, b3=b3)


if __name__ == "__main__":
    key = jax.random.PRNGKey(0)
    kp, kx = jax.random.split(key)
    params = init_params(kp)

    # small batch of scalar inputs, matching Linear(1, ...) input convention
    # (at this size dispatch overhead dominates; the grid/tiling pays off for
    #  B in the thousands).
    x = jax.random.normal(kx, (8, 1), dtype=jnp.float32)

    out = mlp_forward(x, params)
    out = jax.block_until_ready(out)

    # reference check in plain JAX f32 (eval-mode dropout == identity);
    # tolerance loosened because fc2 runs in bf16 on the MXU.
    h = jnp.dot(x, params["w1"]) + params["b1"]
    h = jnp.where(h > 0, h, 0.01 * h)
    h = jnp.dot(h, params["w2"]) + params["b2"]
    h = jnp.where(h > 0, h, 0.01 * h)
    ref = jnp.dot(h, params["w3"]) + params["b3"]

    assert out.shape == (8, 1)
    assert jnp.allclose(out, ref, atol=2e-2, rtol=2e-2), (
        f"max abs err {jnp.max(jnp.abs(out - ref)):.3e}")

    print("KERNEL_OK")
</pallas_src>

<mosaic_0001>
module attributes {stable_mosaic.version = 11 : i64} {
  func.func @_mlp_kernel(%arg0: i32, %arg1: memref<8x1xf32, #tpu.memory_space<vmem>>, %arg2: memref<1x128xf32, #tpu.memory_space<vmem>>, %arg3: memref<1x128xf32, #tpu.memory_space<vmem>>, %arg4: memref<128x128xbf16, #tpu.memory_space<vmem>>, %arg5: memref<1x128xf32, #tpu.memory_space<vmem>>, %arg6: memref<1x128xf32, #tpu.memory_space<vmem>>, %arg7: memref<1x1xf32, #tpu.memory_space<smem>>, %arg8: memref<8x1xf32, #tpu.memory_space<vmem>>) attributes {dimension_semantics = [#tpu.dimension_semantics<parallel>], iteration_bounds = array<i64: 1>, scalar_prefetch = 0 : i64, scratch_operands = 0 : i64, tpu.core_type = #tpu.core_type<tc>, window_params = [{transform_indices = @transform_0, window_bounds = array<i64: 8, 1>}, {pipeline_mode = #tpu.pipeline_mode<synchronous>, transform_indices = @transform_1, window_bounds = array<i64: 1, 128>}, {pipeline_mode = #tpu.pipeline_mode<synchronous>, transform_indices = @transform_2, window_bounds = array<i64: 1, 128>}, {pipeline_mode = #tpu.pipeline_mode<synchronous>, transform_indices = @transform_3, window_bounds = array<i64: 128, 128>}, {pipeline_mode = #tpu.pipeline_mode<synchronous>, transform_indices = @transform_4, window_bounds = array<i64: 1, 128>}, {pipeline_mode = #tpu.pipeline_mode<synchronous>, transform_indices = @transform_5, window_bounds = array<i64: 1, 128>}, {transform_indices = @transform_6, window_bounds = array<i64: 1, 1>}, {transform_indices = @transform_7, window_bounds = array<i64: 8, 1>}]} {
    %c0 = arith.constant 0 : index
    %c0_0 = arith.constant 0 : index
    %0 = vector.load %arg1[%c0, %c0_0] : memref<8x1xf32, #tpu.memory_space<vmem>>, vector<8x1xf32>
    %c0_1 = arith.constant 0 : index
    %c0_2 = arith.constant 0 : index
    %1 = vector.load %arg2[%c0_1, %c0_2] : memref<1x128xf32, #tpu.memory_space<vmem>>, vector<1x128xf32>
    %2 = vector.broadcast %0 : vector<8x1xf32> to vector<8x128xf32>
    %3 = vector.broadcast %1 : vector<1x128xf32> to vector<8x128xf32>
    %4 = arith.mulf %2, %3 : vector<8x128xf32>
    %c0_3 = arith.constant 0 : index
    %c0_4 = arith.constant 0 : index
    %5 = vector.load %arg3[%c0_3, %c0_4] : memref<1x128xf32, #tpu.memory_space<vmem>>, vector<1x128xf32>
    %6 = vector.broadcast %5 : vector<1x128xf32> to vector<8x128xf32>
    %7 = arith.addf %4, %6 : vector<8x128xf32>
    %cst = arith.constant 0.00999999977 : f32
    %8 = vector.broadcast %cst : f32 to vector<8x128xf32>
    %9 = arith.mulf %8, %7 : vector<8x128xf32>
    %10 = arith.maximumf %7, %9 : vector<8x128xf32>
    %11 = arith.truncf %10 : vector<8x128xf32> to vector<8x128xbf16>
    %c0_5 = arith.constant 0 : index
    %c0_6 = arith.constant 0 : index
    %12 = vector.load %arg4[%c0_5, %c0_6] : memref<128x128xbf16, #tpu.memory_space<vmem>>, vector<128x128xbf16>
    %cst_7 = arith.constant dense<0.000000e+00> : vector<8x128xf32>
    %13 = tpu.matmul %11, %12, %cst_7 {dimension_numbers = #tpu.dot_dimension_numbers<[1], [0], [0], [1], [0, 0, 1, 1], [], []>} : vector<8x128xbf16>, vector<128x128xbf16>, vector<8x128xf32> -> vector<8x128xf32>
    %c0_8 = arith.constant 0 : index
    %c0_9 = arith.constant 0 : index
    %14 = vector.load %arg5[%c0_8, %c0_9] : memref<1x128xf32, #tpu.memory_space<vmem>>, vector<1x128xf32>
    %15 = vector.broadcast %14 : vector<1x128xf32> to vector<8x128xf32>
    %16 = arith.addf %13, %15 : vector<8x128xf32>
    %cst_10 = arith.constant 0.00999999977 : f32
    %17 = vector.broadcast %cst_10 : f32 to vector<8x128xf32>
    %18 = arith.mulf %17, %16 : vector<8x128xf32>
    %19 = arith.maximumf %16, %18 : vector<8x128xf32>
    %c0_11 = arith.constant 0 : index
    %c0_12 = arith.constant 0 : index
    %20 = vector.load %arg6[%c0_11, %c0_12] : memref<1x128xf32, #tpu.memory_space<vmem>>, vector<1x128xf32>
    %21 = vector.broadcast %20 : vector<1x128xf32> to vector<8x128xf32>
    %22 = arith.mulf %19, %21 : vector<8x128xf32>
    %cst_13 = arith.constant dense<0.000000e+00> : vector<8xf32>
    %23 = vector.multi_reduction <add>, %22, %cst_13 [1] : vector<8x128xf32> to vector<8xf32>
    %24 = vector.shape_cast %23 : vector<8xf32> to vector<8x1xf32>
    %c0_14 = arith.constant 0 : index
    %c0_15 = arith.constant 0 : index
    %25 = memref.load %arg7[%c0_14, %c0_15] : memref<1x1xf32, #tpu.memory_space<smem>>
    %26 = vector.broadcast %25 : f32 to vector<8x1xf32>
    %27 = arith.addf %24, %26 : vector<8x1xf32>
    %c0_16 = arith.constant 0 : index
    %c0_17 = arith.constant 0 : index
    %28 = vector.load %arg8[%c0_16, %c0_17] : memref<8x1xf32, #tpu.memory_space<vmem>>, vector<8x1xf32>
    tpu.vector_store %arg8[%c0_16, %c0_17], %27 {strides = array<i32>} : memref<8x1xf32, #tpu.memory_space<vmem>>, vector<8x1xf32>,
    return
  }
  func.func @transform_0(%arg0: i32) -> (i32, i32) {
    %c0_i32 = arith.constant 0 : i32
    %c0_i32_0 = arith.constant 0 : i32
    return %arg0, %c0_i32 : i32, i32
  }
  func.func @transform_1(%arg0: i32) -> (i32, i32) {
    %c0_i32 = arith.constant 0 : i32
    %c0_i32_0 = arith.constant 0 : i32
    %c0_i32_1 = arith.constant 0 : i32
    return %c0_i32, %c0_i32_0 : i32, i32
  }
  func.func @transform_2(%arg0: i32) -> (i32, i32) {
    %c0_i32 = arith.constant 0 : i32
    %c0_i32_0 = arith.constant 0 : i32
    %c0_i32_1 = arith.constant 0 : i32
    return %c0_i32, %c0_i32_0 : i32, i32
  }
  func.func @transform_3(%arg0: i32) -> (i32, i32) {
    %c0_i32 = arith.constant 0 : i32
    %c0_i32_0 = arith.constant 0 : i32
    %c0_i32_1 = arith.constant 0 : i32
    return %c0_i32, %c0_i32_0 : i32, i32
  }
  func.func @transform_4(%arg0: i32) -> (i32, i32) {
    %c0_i32 = arith.constant 0 : i32
    %c0_i32_0 = arith.constant 0 : i32
    %c0_i32_1 = arith.constant 0 : i32
    return %c0_i32, %c0_i32_0 : i32, i32
  }
  func.func @transform_5(%arg0: i32) -> (i32, i32) {
    %c0_i32 = arith.constant 0 : i32
    %c0_i32_0 = arith.constant 0 : i32
    %c0_i32_1 = arith.constant 0 : i32
    return %c0_i32, %c0_i32_0 : i32, i32
  }
  func.func @transform_6(%arg0: i32) -> (i32, i32) {
    %c0_i32 = arith.constant 0 : i32
    %c0_i32_0 = arith.constant 0 : i32
    %c0_i32_1 = arith.constant 0 : i32
    return %c0_i32, %c0_i32_0 : i32, i32
  }
  func.func @transform_7(%arg0: i32) -> (i32, i32) {
    %c0_i32 = arith.constant 0 : i32
    %c0_i32_0 = arith.constant 0 : i32
    return %arg0, %c0_i32 : i32, i32
  }
}

</mosaic_0001>

<bundles_post_ra>
// kernel: tpu_custom_call.1
= control target key start
LH: loop header
LB: loop body
LE: loop exit
PB: predicated region body
PF: predicated region fallthrough
CT: control target
= control target key end

     0   :  { %13 = vsyncpa [#allocation4], 0  ;;  %s280_s24 = smov [#allocation3]   ;;  %s359_s0 = inlined_call_operand.vmem [shape: f32[8,1], index: 0, kind: input, shape index: {}]   ;;  %s360_s1 = inlined_call_operand.vmem [shape: f32[1,128], index: 1, kind: input, shape index: {}]   ;;  %s361_s2 = inlined_call_operand.vmem [shape: f32[1,128], index: 2, kind: input, shape index: {}]   ;;  %s362_s3 = inlined_call_operand.hbm [shape: bf16[128,128], index: 3, kind: input, shape index: {}]   ;;  %s363_s4 = inlined_call_operand.vmem [shape: f32[1,128], index: 4, kind: input, shape index: {}]   ;;  %s364_s5 = inlined_call_operand.vmem [shape: f32[1,128], index: 5, kind: input, shape index: {}]   ;;  %s365_s6 = inlined_call_operand.<no memory space> [shape: f32[1,1], index: 6, kind: input, shape index: {}]   ;;  %s366_s7 = inlined_call_operand.vmem [shape: f32[8,1], index: 7, kind: output, shape index: {}]  }
   0x1   :  { %s25_s25 = sshll.u32 %s280_s24, 4  ;;  %s256_s28 = scalar_lea.hbm %s362_s3, 1024  ;;  %s26_s25 = int_to_ptr.vmem [resolvable:$true] %s25_s25 }
   0x2   :  { %p257_p0 = scmp.ne.s32.totalorder %s362_s3, %s256_s28  ;;  %p260_p1 = scmp.lt.u32.totalorder %s256_s28, %s362_s3 }
   0x4   :  { %p262_p2 = pnand %p260_p1, %p257_p0 }
   0x6   :  { %265 = shalt.err (!%p262_p2)
}
   0x7   :  { %s266_s10 = scalar_lea.vmem %s26_s25, 1024  ;;  %p271_p4 = scmp.lt.s32.totalorder %s26_s25, %s26_s25 }
   0x8   :  { %p267_p3 = scmp.ne.s32.totalorder %s26_s25, %s266_s10  ;;  %p272_p5 = scmp.lt.s32.totalorder %s266_s10, %s266_s10 }
   0xa   :  { %p273_p6 = por %p272_p5, %p271_p4 }
   0xc   :  { %p274_p7 = pnand %p273_p6, %p267_p3 }
   0xe   :  { %277 = shalt.err (!%p274_p7)
}
   0xf   :  { %s281_s11 = smov 64   ;;  %s282_s12 = smov 4  }
  0x10   :  { %31 = dma.hbm_to_vmem [thread:$0]  %s362_s3, 1024, %s26_s25, [#allocation4], %s281_s11, %s281_s11, %s282_s12  }
  0x11   :  { %278 = dma.done.wait [#allocation4], 1024  }
  0x12   :  { %279 = vsyncadd [#allocation4], 4294966272  ;;  %v283_v0 = vmov 0   ;;  %v284_v1 = vmov 0.0   ;;  %v42_v2 = vld [vmem:[%s359_s0] sm:$0xff]  ;;  %v249_v4 = vld [vmem:[#allocation3 + $0x8] sm:$0xff]   ;;  %v191_v29 = vstv %s365_s6 }
  0x13   :  { %247 = vset.pattern.permute.xlu0 %v283_v0  ;;  %221 = vmatprep.subr.bf16.mxu0 %v284_v1  ;;  %v248_v3 = vld [vmem:[#allocation3] sm:$0xff]   ;;  %vm285_vm0 = vmmov 0   ;;  %v250_v5 = vld [vmem:[#allocation3 + $0x10] sm:$0xff]   ;;  %v251_v6 = vld [vmem:[#allocation3 + $0x18] sm:$0xff]   ;;  %vm193_vm1 = vcmask 7168  }
  0x14   :  { %46 = vperm.xlu0 %247, %v42_v2   ;;  %222 = vmatpush3.bf16.msra.mxu0 %v248_v3  ;;  %v252_v7 = vld [vmem:[#allocation3 + $0x20] sm:$0xff]   ;;  %v253_v8 = vld [vmem:[#allocation3 + $0x28] sm:$0xff]   ;;  %v254_v9 = vld [vmem:[#allocation3 + $0x30] sm:$0xff]  }
  0x15   :  { %223 = vmatprep.subr.bf16.mxu0 %v284_v1  ;;  %237 = vmatprep.mubr.msk.bf16.mxu0 %vm285_vm0, %v284_v1  ;;  %v255_v10 = vld [vmem:[#allocation3 + $0x38] sm:$0xff]   ;;  %v200_v11 = vld [vmem:[%s360_s1] ss:$0 sm:$0xff] }
  0x16   :  { %v201_v12 = vld [vmem:[%s361_s2] ss:$0 sm:$0xff] }
  0x17   :  { %v202_v19 = vld [vmem:[%s363_s4] ss:$0 sm:$0xff] }
  0x18   :  { %224 = vmatpush3.bf16.msra.mxu0 %v249_v4  ;;  %v211_v26 = vld [vmem:[%s364_s5] ss:$0 sm:$0xff] }
  0x19   :  { %225 = vmatprep.subr.bf16.mxu0 %v284_v1 }
  0x1c   :  { %226 = vmatpush3.bf16.msra.mxu0 %v250_v5 }
  0x1d   :  { %227 = vmatprep.subr.bf16.mxu0 %v284_v1 }
  0x20   :  { %228 = vmatpush3.bf16.msra.mxu0 %v251_v6 }
  0x21   :  { %229 = vmatprep.subr.bf16.mxu0 %v284_v1 }
  0x24   :  { %230 = vmatpush3.bf16.msra.mxu0 %v252_v7 }
  0x25   :  { %231 = vmatprep.subr.bf16.mxu0 %v284_v1 }
  0x28   :  { %232 = vmatpush3.bf16.msra.mxu0 %v253_v8 }
  0x29   :  { %233 = vmatprep.subr.bf16.mxu0 %v284_v1 }
  0x2c   :  { %234 = vmatpush3.bf16.msra.mxu0 %v254_v9 }
  0x2d   :  { %235 = vmatprep.subr.bf16.mxu0 %v284_v1 }
  0x30   :  { %236 = vmatpush3.bf16.msra.mxu0 %v255_v10 }
  0x93   :  { %v47_v13 = vpop.permute.xlu0 %46 }
  0x94   :  { %v55_v14 = vmul.f32 %v200_v11, %v47_v13 }
  0x96   :  { %v63_v15 = vadd.f32 %v201_v12, %v55_v14 }
  0x98   :  { %v64_v16 = vmul.f32 0.01, %v63_v15 }
  0x9a   :  { %v65_v17 = vmax.f32 %v63_v15, %v64_v16 }
  0x9c   :  { %v66_v18 = vpack.c.bf16 %v65_v17, %v65_v17 }
  0x9e   :  { %238 = vmatmul.mubr.bf16.vlgmr.msra.gmra.mrb[0].mxu0 %v66_v18 }
 0x171   :  { %v172_v20 = vpop.f32.mrb[0].mxu0 }
 0x172   :  { %v173_v21 = vadd.f32 %v202_v19, %v172_v20  ;;  %v239_v22 = vpop.f32.mrb[1].mxu0 }
 0x173   :  { %v175_v23 = vpop.f32.mrb[2].mxu0 }
 0x174   :  { %v178_v24 = vmul.f32 0.01, %v173_v21  ;;  %v240_v25 = vpop.f32.mrb[3].mxu0 }
 0x176   :  { %v179_v27 = vmax.f32 %v173_v21, %v178_v24 }
 0x178   :  { %v187_v28 = vmul.f32 %v211_v26, %v179_v27 }
 0x17a   :  { %188 = vadd.xlane.f32.xlu0 %v187_v28 }
 0x207   :  { %v189_v30 = vpop.xlane.xlu0 %188 }
 0x208   :  { %v192_v31 = vadd.f32 %v191_v29, %v189_v30 }
 0x20a   :  { %194 = vst.msk [vmem:[%s366_s7] sm:$0xff] %vm193_vm1, %v192_v31 }
 0x20b   :  { %199 = vsyncpa [#allocation4], 1 }

</bundles_post_ra>
